<compile_context>
chip_gen: v6e
topology: v6e:2x2x1
jax: 0.10.0
libtpu: 0.0.40
codegen_flags: <defaults>
</compile_context>

<pallas_src>
import functools

import jax
import jax.numpy as jnp
from jax.experimental import pallas as pl
from jax.experimental.pallas import tpu as pltpu

_LANE = 128  # TPU vreg lane width.


def _round_up(n: int, m: int) -> int:
    return ((n + m - 1) // m) * m


def _cdiv(a: int, b: int) -> int:
    return -(-a // b)


def _toy_mlp_kernel(x_ref, w1T_ref, b1_ref, w2T_ref, b2_ref, oT_ref):
    # Layer 1 (transposed): h^T = W1^T @ x^T  -> (10, tb), batch on lanes.
    # x_ref holds the natural (tb, 10) tile; contracting the LAST dims of both
    # operands avoids any wrapper-side transpose of x.
    hT = jax.lax.dot_general(
        w1T_ref[...], x_ref[...],
        dimension_numbers=(((1,), (1,)), ((), ())),
        preferred_element_type=jnp.float32,
    )
    hT = jnp.maximum(hT + b1_ref[...], 0.0)        # bias (10,1) broadcasts over lanes
    # Layer 2 (transposed): y^T = W2^T @ h^T + b2 -> (5, tb), lane-dense store.
    yT = jnp.dot(w2T_ref[...], hT, preferred_element_type=jnp.float32) + b2_ref[...]
    oT_ref[...] = yT.astype(oT_ref.dtype)


@functools.partial(jax.jit, static_argnames=("block_b", "transpose_output"))
def toy_model_forward(x, w1, b1, w2, b2, *, block_b=16384, transpose_output=True):
    """Fused ToyModel forward.

    x : (B, 10) f32
    w1: (10, 10) stored (in, out)  == PyTorch net1.weight.T
    b1: (1, 10)
    w2: (10, 5)  stored (in, out)  == PyTorch net2.weight.T
    b2: (1, 5)
    returns (B, 5)   (or (5, B) if transpose_output=False)
    """
    B, K = x.shape
    H = w1.shape[1]   # 10
    N = w2.shape[1]   # 5

    if B == 0:  # guard degenerate batch
        return jnp.zeros((0, N) if transpose_output else (N, 0), x.dtype)

    # Pad the batch only to the lane width (128).  For B % 128 == 0 this is a
    # no-op (no extra HBM pass); for ragged B it wastes at most 127 rows.
    Bp = _round_up(B, _LANE)
    x_in = x if Bp == B else jnp.zeros((Bp, K), x.dtype).at[:B, :].set(x)

    # Batch tile: natural (tb, 10) blocks lane-pad 10->128 in VMEM (~512 B/row,
    # double buffered), so cap at 16K-32K rows; also ensure the grid has >= 2
    # steps when the batch allows it so both v7x TensorCores get work.
    tb = _round_up(min(block_b, 32768), _LANE)
    tb = min(tb, max(_LANE, _round_up(_cdiv(Bp, 2), _LANE)))
    grid = _cdiv(Bp, tb)   # partial (128-aligned) edge block handled by Pallas

    # Tiny, VMEM-resident operands (constant index maps below).
    w1T = w1.T               # (10, 10)
    w2T = w2.T               # (5, 10)
    b1c = b1.reshape(H, 1)   # (10, 1)
    b2c = b2.reshape(N, 1)   # (5, 1)

    # Scoped-VMEM budget (raise v5e's 16 MiB default; v6e/v7x default is 32 MiB).
    vmem_bytes = (
        2 * tb * 128 * 4      # x tiles: lane-padded (tb,128) f32, double buffered
        + 2 * tb * 8 * 4      # out tiles: (5->8, tb) f32, double buffered
        + 4 * tb * 16 * 4     # h^T / y^T / transpose staging headroom
        + (4 << 20)           # weights, biases, compiler slack
    )
    vmem_limit = int(min(max(vmem_bytes, 32 << 20), 56 << 20))

    outT = pl.pallas_call(
        _toy_mlp_kernel,
        out_shape=jax.ShapeDtypeStruct((N, Bp), x.dtype),
        grid=(grid,),
        in_specs=[
            pl.BlockSpec((tb, K), lambda i: (i, 0)),   # natural x tile (no wrapper transpose)
            pl.BlockSpec((H, K), lambda i: (0, 0)),    # weights/biases stay resident
            pl.BlockSpec((H, 1), lambda i: (0, 0)),
            pl.BlockSpec((N, H), lambda i: (0, 0)),
            pl.BlockSpec((N, 1), lambda i: (0, 0)),
        ],
        out_specs=pl.BlockSpec((N, tb), lambda i: (0, i)),   # lane-dense (5, tb) stores
        compiler_params=pltpu.CompilerParams(
            # Batch tiles are independent: pipeline them and (on v7x) shard the
            # grid across both TensorCores.
            dimension_semantics=("parallel",),
            vmem_limit_bytes=vmem_limit,
        ),
        cost_estimate=pl.CostEstimate(
            flops=2 * Bp * (K * H + H * N),
            transcendentals=0,
            bytes_accessed=Bp * (K + N) * 4 + (K * H + H + H * N + N) * 4,
        ),
    )(x_in, w1T, b1c, w2T, b2c)

    outT = outT[:, :B]
    # TODO(synk): for a downstream consumer that accepts (5, B), pass
    # transpose_output=False to skip this extra HBM pass over the result.
    return outT.T if transpose_output else outT


def init_params(key):
    """Deterministic init mimicking nn.Linear defaults: U(-1/sqrt(fan_in), 1/sqrt(fan_in))."""
    k1, k2, k3, k4 = jax.random.split(key, 4)
    bound = 1.0 / jnp.sqrt(10.0)
    # Stored as (in, out) — equivalent to PyTorch weight (out, in) transposed.
    w1 = jax.random.uniform(k1, (10, 10), jnp.float32, -bound, bound)
    b1 = jax.random.uniform(k2, (1, 10), jnp.float32, -bound, bound)
    w2 = jax.random.uniform(k3, (10, 5), jnp.float32, -bound, bound)
    b2 = jax.random.uniform(k4, (1, 5), jnp.float32, -bound, bound)
    return w1, b1, w2, b2


def _reference(x, w1, b1, w2, b2):
    return jnp.maximum(x @ w1 + b1, 0.0) @ w2 + b2


if __name__ == "__main__":
    key = jax.random.PRNGKey(0)
    kx, kx2, kx3, kp = jax.random.split(key, 4)
    w1, b1, w2, b2 = init_params(kp)

    # Small batch (pads up to a single 128-row lane tile, grid of 1).
    batch = 8
    x = jax.random.normal(kx, (batch, 10), jnp.float32)
    out = jax.block_until_ready(toy_model_forward(x, w1, b1, w2, b2))
    ref = _reference(x, w1, b1, w2, b2)
    assert out.shape == (batch, 5)
    assert jnp.allclose(out, ref, atol=1e-5, rtol=1e-5)

    # Ragged batch (not a multiple of 128): pad-to-128 + 2-step grid with a
    # partial (128-aligned) edge block.
    batch2 = 300
    x2 = jax.random.normal(kx2, (batch2, 10), jnp.float32)
    out2 = jax.block_until_ready(toy_model_forward(x2, w1, b1, w2, b2))
    ref2 = _reference(x2, w1, b1, w2, b2)
    assert out2.shape == (batch2, 5)
    assert jnp.allclose(out2, ref2, atol=1e-5, rtol=1e-5)

    # Aligned batch (multiple of 128): zero-copy input path, 2 grid steps.
    batch3 = 512
    x3 = jax.random.normal(kx3, (batch3, 10), jnp.float32)
    out3 = jax.block_until_ready(toy_model_forward(x3, w1, b1, w2, b2))
    ref3 = _reference(x3, w1, b1, w2, b2)
    assert out3.shape == (batch3, 5)
    assert jnp.allclose(out3, ref3, atol=1e-5, rtol=1e-5)

    print("KERNEL_OK")
</pallas_src>

<mosaic_0001>
module attributes {stable_mosaic.version = 11 : i64} {
  func.func @_toy_mlp_kernel(%arg0: i32, %arg1: memref<128x10xf32, #tpu.memory_space<vmem>>, %arg2: memref<10x10xf32, #tpu.memory_space<vmem>>, %arg3: memref<10x1xf32, #tpu.memory_space<vmem>>, %arg4: memref<5x10xf32, #tpu.memory_space<vmem>>, %arg5: memref<5x1xf32, #tpu.memory_space<vmem>>, %arg6: memref<5x128xf32, #tpu.memory_space<vmem>>) attributes {dimension_semantics = [#tpu.dimension_semantics<parallel>], iteration_bounds = array<i64: 1>, scalar_prefetch = 0 : i64, scratch_operands = 0 : i64, tpu.core_type = #tpu.core_type<tc>, window_params = [{transform_indices = @transform_0, window_bounds = array<i64: 128, 10>}, {pipeline_mode = #tpu.pipeline_mode<synchronous>, transform_indices = @transform_1, window_bounds = array<i64: 10, 10>}, {pipeline_mode = #tpu.pipeline_mode<synchronous>, transform_indices = @transform_2, window_bounds = array<i64: 10, 1>}, {pipeline_mode = #tpu.pipeline_mode<synchronous>, transform_indices = @transform_3, window_bounds = array<i64: 5, 10>}, {pipeline_mode = #tpu.pipeline_mode<synchronous>, transform_indices = @transform_4, window_bounds = array<i64: 5, 1>}, {transform_indices = @transform_5, window_bounds = array<i64: 5, 128>}]} {
    %c0 = arith.constant 0 : index
    %c0_0 = arith.constant 0 : index
    %0 = vector.load %arg2[%c0, %c0_0] : memref<10x10xf32, #tpu.memory_space<vmem>>, vector<10x10xf32>
    %c0_1 = arith.constant 0 : index
    %c0_2 = arith.constant 0 : index
    %1 = vector.load %arg1[%c0_1, %c0_2] : memref<128x10xf32, #tpu.memory_space<vmem>>, vector<128x10xf32>
    %cst = arith.constant dense<0.000000e+00> : vector<10x128xf32>
    %2 = tpu.matmul %0, %1, %cst {dimension_numbers = #tpu.dot_dimension_numbers<[1], [1], [0], [0], [0, 0, 1, 0], [], []>} : vector<10x10xf32>, vector<128x10xf32>, vector<10x128xf32> -> vector<10x128xf32>
    %c0_3 = arith.constant 0 : index
    %c0_4 = arith.constant 0 : index
    %3 = vector.load %arg3[%c0_3, %c0_4] : memref<10x1xf32, #tpu.memory_space<vmem>>, vector<10x1xf32>
    %4 = vector.broadcast %3 : vector<10x1xf32> to vector<10x128xf32>
    %5 = arith.addf %2, %4 : vector<10x128xf32>
    %cst_5 = arith.constant 0.000000e+00 : f32
    %6 = vector.broadcast %cst_5 : f32 to vector<10x128xf32>
    %7 = arith.maximumf %5, %6 : vector<10x128xf32>
    %c0_6 = arith.constant 0 : index
    %c0_7 = arith.constant 0 : index
    %8 = vector.load %arg4[%c0_6, %c0_7] : memref<5x10xf32, #tpu.memory_space<vmem>>, vector<5x10xf32>
    %cst_8 = arith.constant dense<0.000000e+00> : vector<5x128xf32>
    %9 = tpu.matmul %8, %7, %cst_8 {dimension_numbers = #tpu.dot_dimension_numbers<[1], [0], [0], [1], [0, 0, 1, 1], [], []>} : vector<5x10xf32>, vector<10x128xf32>, vector<5x128xf32> -> vector<5x128xf32>
    %c0_9 = arith.constant 0 : index
    %c0_10 = arith.constant 0 : index
    %10 = vector.load %arg5[%c0_9, %c0_10] : memref<5x1xf32, #tpu.memory_space<vmem>>, vector<5x1xf32>
    %11 = vector.broadcast %10 : vector<5x1xf32> to vector<5x128xf32>
    %12 = arith.addf %9, %11 : vector<5x128xf32>
    %c0_11 = arith.constant 0 : index
    %c0_12 = arith.constant 0 : index
    %13 = vector.load %arg6[%c0_11, %c0_12] : memref<5x128xf32, #tpu.memory_space<vmem>>, vector<5x128xf32>
    tpu.vector_store %arg6[%c0_11, %c0_12], %12 {strides = array<i32>} : memref<5x128xf32, #tpu.memory_space<vmem>>, vector<5x128xf32>,
    return
  }
  func.func @transform_0(%arg0: i32) -> (i32, i32) {
    %c0_i32 = arith.constant 0 : i32
    %c0_i32_0 = arith.constant 0 : i32
    return %arg0, %c0_i32 : i32, i32
  }
  func.func @transform_1(%arg0: i32) -> (i32, i32) {
    %c0_i32 = arith.constant 0 : i32
    %c0_i32_0 = arith.constant 0 : i32
    %c0_i32_1 = arith.constant 0 : i32
    return %c0_i32, %c0_i32_0 : i32, i32
  }
  func.func @transform_2(%arg0: i32) -> (i32, i32) {
    %c0_i32 = arith.constant 0 : i32
    %c0_i32_0 = arith.constant 0 : i32
    %c0_i32_1 = arith.constant 0 : i32
    return %c0_i32, %c0_i32_0 : i32, i32
  }
  func.func @transform_3(%arg0: i32) -> (i32, i32) {
    %c0_i32 = arith.constant 0 : i32
    %c0_i32_0 = arith.constant 0 : i32
    %c0_i32_1 = arith.constant 0 : i32
    return %c0_i32, %c0_i32_0 : i32, i32
  }
  func.func @transform_4(%arg0: i32) -> (i32, i32) {
    %c0_i32 = arith.constant 0 : i32
    %c0_i32_0 = arith.constant 0 : i32
    %c0_i32_1 = arith.constant 0 : i32
    return %c0_i32, %c0_i32_0 : i32, i32
  }
  func.func @transform_5(%arg0: i32) -> (i32, i32) {
    %c0_i32 = arith.constant 0 : i32
    %c0_i32_0 = arith.constant 0 : i32
    return %c0_i32, %arg0 : i32, i32
  }
}

</mosaic_0001>

<bundles_post_ra>
// kernel: toy_model_forward.1
= control target key start
LH: loop header
LB: loop body
LE: loop exit
PB: predicated region body
PF: predicated region fallthrough
CT: control target
= control target key end

     0   :  { %vm50_vm0 = vcmask 80896   ;;  %v359_v2 = vmov 0   ;;  %v360_v21 = vmov 0.0   ;;  %vm361_vm1 = vmmov 0   ;;  %s496_s0 = inlined_call_operand.vmem [shape: f32[128,10], index: 0, kind: input, shape index: {}]   ;;  %s497_s1 = inlined_call_operand.vmem [shape: f32[10,10], index: 1, kind: input, shape index: {}]   ;;  %s498_s2 = inlined_call_operand.vmem [shape: f32[10,1], index: 2, kind: input, shape index: {}]   ;;  %s499_s4 = inlined_call_operand.vmem [shape: f32[5,1], index: 4, kind: input, shape index: {}]   ;;  %s500_s3 = inlined_call_operand.vmem [shape: f32[5,10], index: 3, kind: input, shape index: {}]   ;;  %s501_s5 = inlined_call_operand.vmem [shape: f32[5,128], index: 5, kind: output, shape index: {}]  }
   0x1   :  { %v37_v0 = vld [vmem:[%s496_s0 + $0x78] sm:$0xff]  ;;  %v36_v1 = vld [vmem:[%s496_s0 + $0x70] sm:$0xff]  ;;  %357 = vset.pattern.permute.xlu0 %v359_v2  ;;  %358 = vset.pattern.permute.xlu1 %v359_v2  ;;  %v35_v3 = vld [vmem:[%s496_s0 + $0x68] sm:$0xff]  ;;  %vm192_vm2 = vcmask 1041408  }
   0x2   :  { %312 = vmatprep.subr.msk.mxu0 %vm50_vm0, %v37_v0  ;;  %v20_v4 = vld [vmem:[%s497_s1] sm:$0xff]  ;;  %v39_v5 = vld [vmem:[%s498_s2 + $0x8] sm:$0x3]  ;;  %v33_v8 = vld [vmem:[%s496_s0 + $0x58] sm:$0xff]  ;;  %347 = vmatprep.subr.mxu1 %v360_v21 }
   0x3   :  { %313 = vmatpush3.xpose.msk.msra.mxu0 %vm50_vm0, %v37_v0  ;;  %344 = vmatprep.mubr.msk.f32.mxu0 %vm50_vm0, %v20_v4  ;;  %v34_v6 = vld [vmem:[%s496_s0 + $0x60] sm:$0xff]  ;;  %v32_v9 = vld [vmem:[%s496_s0 + $0x50] sm:$0xff]  ;;  %v31_v10 = vld [vmem:[%s496_s0 + $0x48] sm:$0xff] }
   0x4   :  { %314 = vmatprep.subr.msk.mxu0 %vm50_vm0, %v36_v1  ;;  %47 = vperm.xlu0 %357, %v39_v5   ;;  %v38_v7 = vld [vmem:[%s498_s2] sm:$0xff]  ;;  %v29_v12 = vld [vmem:[%s496_s0 + $0x38] sm:$0xff]  ;;  %v28_v13 = vld [vmem:[%s496_s0 + $0x30] sm:$0xff] }
   0x5   :  { %v30_v11 = vld [vmem:[%s496_s0 + $0x40] sm:$0xff]  ;;  %v27_v14 = vld [vmem:[%s496_s0 + $0x28] sm:$0xff]  ;;  %v25_v16 = vld [vmem:[%s496_s0 + $0x18] sm:$0xff]  ;;  %351 = vmatprep.mubr.msk.f32.mxu1 %vm361_vm1, %v360_v21 }
   0x6   :  { %v26_v15 = vld [vmem:[%s496_s0 + $0x20] sm:$0xff]  ;;  %v24_v17 = vld [vmem:[%s496_s0 + $0x10] sm:$0xff]  ;;  %v23_v18 = vld [vmem:[%s496_s0 + $0x8] sm:$0xff] }
   0x7   :  { %315 = vmatpush3.xpose.msk.msra.mxu0 %vm50_vm0, %v36_v1  ;;  %v22_v19 = vld [vmem:[%s496_s0] sm:$0xff]  ;;  %v21_v20 = vld [vmem:[%s497_s1 + $0x8] sm:$0x3] }
   0x8   :  { %316 = vmatprep.subr.msk.mxu0 %vm50_vm0, %v35_v3  ;;  %42 = vperm.xlu0 %357, %v38_v7   ;;  %v183_v22 = vld [vmem:[%s499_s4] sm:$0x1f] }
   0x9   :  { %186 = vperm.xlu1 %358, %v183_v22   ;;  %v182_v31 = vld [vmem:[%s500_s3] sm:$0x1f] }
   0xb   :  { %317 = vmatpush3.xpose.msk.msra.mxu0 %vm50_vm0, %v35_v3 }
   0xc   :  { %318 = vmatprep.subr.msk.mxu0 %vm50_vm0, %v34_v6 }
   0xf   :  { %319 = vmatpush3.xpose.msk.msra.mxu0 %vm50_vm0, %v34_v6 }
  0x10   :  { %320 = vmatprep.subr.msk.mxu0 %vm50_vm0, %v33_v8 }
  0x13   :  { %321 = vmatpush3.xpose.msk.msra.mxu0 %vm50_vm0, %v33_v8 }
  0x14   :  { %322 = vmatprep.subr.msk.mxu0 %vm50_vm0, %v32_v9 }
  0x17   :  { %323 = vmatpush3.xpose.msk.msra.mxu0 %vm50_vm0, %v32_v9 }
  0x18   :  { %324 = vmatprep.subr.msk.mxu0 %vm50_vm0, %v31_v10 }
  0x1b   :  { %325 = vmatpush3.xpose.msk.msra.mxu0 %vm50_vm0, %v31_v10 }
  0x1c   :  { %326 = vmatprep.subr.msk.mxu0 %vm50_vm0, %v30_v11 }
  0x1f   :  { %327 = vmatpush3.xpose.msk.msra.mxu0 %vm50_vm0, %v30_v11 }
  0x20   :  { %328 = vmatprep.subr.msk.mxu0 %vm50_vm0, %v29_v12 }
  0x23   :  { %329 = vmatpush3.xpose.msk.msra.mxu0 %vm50_vm0, %v29_v12 }
  0x24   :  { %330 = vmatprep.subr.msk.mxu0 %vm50_vm0, %v28_v13 }
  0x27   :  { %331 = vmatpush3.xpose.msk.msra.mxu0 %vm50_vm0, %v28_v13 }
  0x28   :  { %332 = vmatprep.subr.msk.mxu0 %vm50_vm0, %v27_v14 }
  0x2b   :  { %333 = vmatpush3.xpose.msk.msra.mxu0 %vm50_vm0, %v27_v14 }
  0x2c   :  { %334 = vmatprep.subr.msk.mxu0 %vm50_vm0, %v26_v15 }
  0x2f   :  { %335 = vmatpush3.xpose.msk.msra.mxu0 %vm50_vm0, %v26_v15 }
  0x30   :  { %336 = vmatprep.subr.msk.mxu0 %vm50_vm0, %v25_v16 }
  0x33   :  { %337 = vmatpush3.xpose.msk.msra.mxu0 %vm50_vm0, %v25_v16 }
  0x34   :  { %338 = vmatprep.subr.msk.mxu0 %vm50_vm0, %v24_v17 }
  0x37   :  { %339 = vmatpush3.xpose.msk.msra.mxu0 %vm50_vm0, %v24_v17 }
  0x38   :  { %340 = vmatprep.subr.msk.mxu0 %vm50_vm0, %v23_v18 }
  0x3b   :  { %341 = vmatpush3.xpose.msk.msra.mxu0 %vm50_vm0, %v23_v18 }
  0x3c   :  { %342 = vmatprep.subr.msk.mxu0 %vm50_vm0, %v22_v19 }
  0x3f   :  { %343 = vmatpush3.xpose.msk.msra.mxu0 %vm50_vm0, %v22_v19 }
  0x42   :  { %345 = vmatmul.mubr.msk.f32.vlgmr.msra.gmra.mxu0 %vm50_vm0, %v21_v20 }
  0x7f   :  { %v48_v23 = vpop.permute.xlu0 %47 }
  0x83   :  { %v43_v26 = vpop.permute.xlu0 %42 }
  0x84   :  { %v187_v32 = vpop.permute.xlu1 %186 }
 0x102   :  { %v346_v24 = vpop.f32.mrf.mxu0 }
 0x103   :  { %v177_v25 = vadd.f32 %v346_v24, %v48_v23 }
 0x104   :  { %v171_v27 = vpop.f32.mrf.mxu0 }
 0x105   :  { %v181_v28 = vmax.f32 %v177_v25, 0.0  ;;  %v172_v29 = vadd.f32 %v171_v27, %v43_v26 }
 0x107   :  { %v180_v30 = vmax.f32 %v172_v29, 0.0  ;;  %348 = vmatpush3.msk.msra.mxu1 %vm192_vm2, %v181_v28 }
 0x108   :  { %349 = vmatprep.subr.mxu1 %v360_v21 }
 0x109   :  { %350 = vmatpush3.msra.mxu1 %v180_v30 }
 0x10a   :  { %352 = vmatmul.mubr.msk.f32.vlgmr.msra.gmra.mxu1 %vm50_vm0, %v182_v31 }
 0x1ca   :  { %v262_v33 = vpop.f32.mrf.mxu1 }
 0x1cb   :  { %v263_v34 = vadd.f32 %v262_v33, %v187_v32 }
 0x1cc   :  { %v353_v35 = vpop.f32.mrf.mxu1 }
 0x1cd   :  { %266 = vst [vmem:[%s501_s5] sm:$0x1f] %v263_v34 }

</bundles_post_ra>
